<compile_context>
chip_gen: v5e
topology: v5e:2x2
jax: 0.10.0
libtpu: 0.0.40
codegen_flags: <defaults>
</compile_context>

<pallas_src>
import math
from functools import partial

import jax
import jax.numpy as jnp
from jax.experimental import pallas as pl
from jax.experimental.pallas import tpu as pltpu


def _round_up(x: int, m: int) -> int:
    return ((x + m - 1) // m) * m


def _r8(x: int) -> int:
    return _round_up(x, 8)


def _r128(x: int) -> int:
    return _round_up(x, 128)


def _vmem_limit_bytes() -> int:
    """Generation-aware scoped-VMEM limit (v7x: ~48 MiB, v5e/v6e: 64 MiB)."""
    phys = 64 * 1024 * 1024
    try:
        info = pltpu.get_tpu_info()
        phys = int(getattr(info, "vmem_capacity_bytes", phys))
    except Exception:
        pass
    return min(64 * 1024 * 1024, (phys * 3) // 4)


def _bytes_flat(tn: int, w: int, h: int, o: int, itemsize: int) -> int:
    """VMEM footprint of the 2-D ("flat") layout incl. (8,128) padding."""
    bx = _r8(tn) * _r128(w * h) * itemsize
    bo = _r8(tn) * _r128(o * h) * itemsize
    bw = _r8(o) * _r128(w * h) * itemsize
    bb = _r8(o) * _r128(h) * itemsize
    bacc = _r8(tn) * _r128(h) * 4 * 2          # f32 accumulator temporaries
    return 2 * (bx + bo + bw + bb) + bacc      # 2x: double buffering


def _bytes_tiled(tn: int, th: int, w: int, o: int, itemsize: int) -> int:
    """VMEM footprint of the 3-D ("tiled") layout incl. sublane padding."""
    bx = tn * _r8(w) * _r128(th) * itemsize
    bo = tn * _r8(o) * _r128(th) * itemsize
    bw = o * _r8(w) * _r128(th) * itemsize
    bb = _r8(o) * _r128(th) * itemsize
    bacc = tn * _r128(th) * 4 * 2
    return 2 * (bx + bo + bw + bb) + bacc


def _lcl_kernel_flat(x_ref, w_ref, b_ref, o_ref, *, n_out_sets, k_size, n_chunks):
    """Flat layout: x_ref (tn, W*H), w_ref (O, W*H), b_ref (O, H), o_ref (tn, O*H)."""
    h = n_chunks
    w = w_ref[...].astype(jnp.float32)          # a few vregs; keep as a value
    b = b_ref[...].astype(jnp.float32)
    # TODO(synk): for very large kernel_size the unrolled python loop should
    # become a lax.fori_loop (or an MXU formulation) to bound code size.
    for o in range(n_out_sets):
        # f32 accumulation; x is read slice-by-slice (small live ranges, loads
        # pipeline under the VALU chain).
        acc = x_ref[:, 0:h].astype(jnp.float32) * w[o, 0:h][None, :]
        for wi in range(1, k_size):
            lo = wi * h
            acc = acc + (x_ref[:, lo:lo + h].astype(jnp.float32)
                         * w[o, lo:lo + h][None, :])
        o_ref[:, o * h:(o + 1) * h] = (acc + b[o, :][None, :]).astype(o_ref.dtype)


def _lcl_kernel_tiled(x_ref, w_ref, b_ref, o_ref, *, n_out_sets, k_size):
    """Tiled layout: x_ref (tn, W, th), w_ref (O, W, th), b_ref (O, th), o_ref (tn, O, th)."""
    w = w_ref[...].astype(jnp.float32)
    b = b_ref[...].astype(jnp.float32)
    for o in range(n_out_sets):
        acc = x_ref[:, 0, :].astype(jnp.float32) * w[o, 0, :][None, :]
        for wi in range(1, k_size):
            acc = acc + (x_ref[:, wi, :].astype(jnp.float32)
                         * w[o, wi, :][None, :])
        # TODO(synk): per-o store is sublane-masked (O < 8); if vst becomes the
        # limiter on v5e, pack all O slabs and issue one dense store.
        o_ref[:, o, :] = (acc + b[o, :][None, :]).astype(o_ref.dtype)


def lcl_forward(x, weight, bias, *, num_chunks, kernel_size):
    """JAX/Pallas equivalent of LCL.forward.

    x      : (N, in_features)
    weight : (out_feature_sets, num_chunks, kernel_size)
    bias   : (out_feature_sets * num_chunks,) or None
    returns: (N, out_feature_sets * num_chunks)
    """
    n, in_features = x.shape
    o_sets, h_dim, w_dim = weight.shape
    assert h_dim == num_chunks and w_dim == kernel_size
    h, w, o = num_chunks, kernel_size, o_sets
    padding = h * w - in_features
    assert padding >= 0
    itemsize = jnp.dtype(x.dtype).itemsize

    # Wrapper glue: pad the feature axis and put the chunk axis (h) minor so
    # the kernel reads/writes lane-dense (.., h) slabs.  One fused XLA copy.
    # TODO(synk): this transpose is an extra HBM pass over x; it could be
    # folded into the kernel (strided in-kernel loads / allow_input_fusion) if
    # it ever dominates end-to-end time.
    x_p = x if padding == 0 else jnp.pad(x, ((0, 0), (0, padding)))
    x_t = x_p.reshape(n, h, w).transpose(0, 2, 1)              # (N, W, H)
    w_t = weight.transpose(0, 2, 1)                            # (O, W, H)
    b_t = (jnp.zeros((o, h), dtype=jnp.float32) if bias is None
           else bias.reshape(o, h))

    vmem_limit = _vmem_limit_bytes()
    budget = (vmem_limit * 7) // 10

    cost = pl.CostEstimate(
        flops=2 * n * o * h * w,
        transcendentals=0,
        bytes_accessed=(n * w * h + o * w * h + o * h + n * o * h) * itemsize,
    )

    # ---------------- flat path: whole chunk axis per block -----------------
    if _bytes_flat(min(n, 8), w, h, o, itemsize) <= budget:
        x2 = x_t.reshape(n, w * h)
        w2 = w_t.reshape(o, w * h)

        tn = n if n < 8 else 8
        for cand in (2048, 1024, 512, 256, 128, 64, 32, 16, 8):
            if cand <= n and _bytes_flat(cand, w, h, o, itemsize) <= budget:
                tn = cand
                break
        # v7x: keep >= 2 grid steps so both TensorCores get work.
        if n > 8 and pl.cdiv(n, tn) < 2:
            tn = max(8, min(tn, _round_up(pl.cdiv(n, 2), 8)))

        grid = (pl.cdiv(n, tn),)
        out = pl.pallas_call(
            partial(_lcl_kernel_flat, n_out_sets=o, k_size=w, n_chunks=h),
            out_shape=jax.ShapeDtypeStruct((n, o * h), x.dtype),
            grid_spec=pltpu.PrefetchScalarGridSpec(
                num_scalar_prefetch=0,
                grid=grid,
                in_specs=[
                    pl.BlockSpec((tn, w * h), lambda i: (i, 0)),
                    pl.BlockSpec((o, w * h), lambda i: (0, 0)),   # resident
                    pl.BlockSpec((o, h), lambda i: (0, 0)),       # resident
                ],
                out_specs=pl.BlockSpec((tn, o * h), lambda i: (i, 0)),
            ),
            compiler_params=pltpu.CompilerParams(
                dimension_semantics=("parallel",),
                vmem_limit_bytes=vmem_limit,
            ),
            cost_estimate=cost,
        )(x2, w2, b_t)
        return out

    # ---------------- tiled path: chunk axis too large, tile it -------------
    th = 128
    for cand in (2048, 1024, 512, 256, 128):
        if cand <= _r128(h) and _bytes_tiled(min(n, 128), cand, w, o, itemsize) <= budget:
            th = cand
            break
    tn = n if n < 8 else 8
    for cand in (1024, 512, 256, 128, 64, 32, 16, 8):
        if cand <= n and _bytes_tiled(cand, th, w, o, itemsize) <= budget:
            tn = cand
            break

    grid = (pl.cdiv(h, th), pl.cdiv(n, tn))   # h outer: weight resident over n
    out3 = pl.pallas_call(
        partial(_lcl_kernel_tiled, n_out_sets=o, k_size=w),
        out_shape=jax.ShapeDtypeStruct((n, o, h), x.dtype),
        grid_spec=pltpu.PrefetchScalarGridSpec(
            num_scalar_prefetch=0,
            grid=grid,
            in_specs=[
                pl.BlockSpec((tn, w, th), lambda j, i: (i, 0, j)),
                pl.BlockSpec((o, w, th), lambda j, i: (0, 0, j)),
                pl.BlockSpec((o, th), lambda j, i: (0, j)),
            ],
            out_specs=pl.BlockSpec((tn, o, th), lambda j, i: (i, 0, j)),
        ),
        compiler_params=pltpu.CompilerParams(
            dimension_semantics=("parallel", "parallel"),
            vmem_limit_bytes=vmem_limit,
        ),
        cost_estimate=cost,
    )(x_t, w_t, b_t)
    return out3.reshape(n, o * h)             # contiguous -> free reshape


def _reference(x, weight, bias, num_chunks, kernel_size):
    """Pure-JAX reference (same math as the PyTorch module)."""
    n = x.shape[0]
    pad = num_chunks * kernel_size - x.shape[1]
    x_r = jnp.pad(x, ((0, 0), (0, pad))).reshape(n, num_chunks, kernel_size)
    out = jnp.einsum("nhw,ohw->noh", x_r, weight).reshape(n, -1)
    return out if bias is None else out + bias


if __name__ == "__main__":
    key = jax.random.PRNGKey(0)

    # Config 1 (small): in_features=18, num_chunks=4 -> kernel_size=5,
    #   padding=2, out_feature_sets=3 -> out_features=12, batch N=2.
    # Config 2: multi-step grid + ragged last N block.
    configs = [
        dict(n=2, in_features=18, num_chunks=4, out_feature_sets=3),
        dict(n=37, in_features=500, num_chunks=128, out_feature_sets=4),
    ]

    ok = True
    for cfg in configs:
        key, kx, kw, kb = jax.random.split(key, 4)
        n = cfg["n"]
        in_features = cfg["in_features"]
        num_chunks = cfg["num_chunks"]
        o_sets = cfg["out_feature_sets"]
        kernel_size = int(math.ceil(in_features / num_chunks))

        # kaiming_uniform_(a=sqrt(5)) on an (O, H, W) tensor: fan_in = H * W
        fan_in = num_chunks * kernel_size
        bound = math.sqrt(2.0 / (1.0 + 5.0)) * math.sqrt(3.0 / fan_in)
        weight = jax.random.uniform(
            kw, (o_sets, num_chunks, kernel_size),
            minval=-bound, maxval=bound, dtype=jnp.float32)
        bias = 0.1 * jax.random.normal(
            kb, (o_sets * num_chunks,), dtype=jnp.float32)
        x = jax.random.normal(kx, (n, in_features), dtype=jnp.float32)

        out = lcl_forward(x, weight, bias,
                          num_chunks=num_chunks, kernel_size=kernel_size)
        out = jax.block_until_ready(out)
        ref = _reference(x, weight, bias, num_chunks, kernel_size)

        ok &= out.shape == (n, o_sets * num_chunks)
        ok &= bool(jnp.allclose(out, ref, atol=1e-5, rtol=1e-5))

    if not ok:
        raise SystemExit("LCL Pallas kernel mismatch vs reference")
    print("KERNEL_OK")
</pallas_src>

<mosaic_0001>
module attributes {stable_mosaic.version = 11 : i64} {
  func.func @_lcl_kernel_flat(%arg0: i32, %arg1: memref<2x20xf32, #tpu.memory_space<vmem>>, %arg2: memref<3x20xf32, #tpu.memory_space<vmem>>, %arg3: memref<3x4xf32, #tpu.memory_space<vmem>>, %arg4: memref<2x12xf32, #tpu.memory_space<vmem>>) attributes {dimension_semantics = [#tpu.dimension_semantics<parallel>], iteration_bounds = array<i64: 1>, scalar_prefetch = 0 : i64, scratch_operands = 0 : i64, tpu.core_type = #tpu.core_type<tc>, window_params = [{transform_indices = @transform_0, window_bounds = array<i64: 2, 20>}, {pipeline_mode = #tpu.pipeline_mode<synchronous>, transform_indices = @transform_1, window_bounds = array<i64: 3, 20>}, {pipeline_mode = #tpu.pipeline_mode<synchronous>, transform_indices = @transform_2, window_bounds = array<i64: 3, 4>}, {transform_indices = @transform_3, window_bounds = array<i64: 2, 12>}]} {
    %c0 = arith.constant 0 : index
    %c0_0 = arith.constant 0 : index
    %0 = vector.load %arg2[%c0, %c0_0] : memref<3x20xf32, #tpu.memory_space<vmem>>, vector<3x20xf32>
    %c0_1 = arith.constant 0 : index
    %c0_2 = arith.constant 0 : index
    %1 = vector.load %arg3[%c0_1, %c0_2] : memref<3x4xf32, #tpu.memory_space<vmem>>, vector<3x4xf32>
    %c0_3 = arith.constant 0 : index
    %c0_4 = arith.constant 0 : index
    %2 = vector.load %arg1[%c0_3, %c0_4] : memref<2x20xf32, #tpu.memory_space<vmem>>, vector<2x4xf32>
    %3 = vector.extract_strided_slice %0 {offsets = [0, 0], sizes = [1, 4], strides = [1, 1]} : vector<3x20xf32> to vector<1x4xf32>
    %4 = vector.shape_cast %3 : vector<1x4xf32> to vector<4xf32>
    %5 = vector.shape_cast %4 : vector<4xf32> to vector<1x4xf32>
    %6 = vector.broadcast %5 : vector<1x4xf32> to vector<2x4xf32>
    %7 = arith.mulf %2, %6 : vector<2x4xf32>
    %c0_5 = arith.constant 0 : index
    %c4 = arith.constant 4 : index
    %8 = vector.load %arg1[%c0_5, %c4] : memref<2x20xf32, #tpu.memory_space<vmem>>, vector<2x4xf32>
    %9 = vector.extract_strided_slice %0 {offsets = [0, 4], sizes = [1, 4], strides = [1, 1]} : vector<3x20xf32> to vector<1x4xf32>
    %10 = vector.shape_cast %9 : vector<1x4xf32> to vector<4xf32>
    %11 = vector.shape_cast %10 : vector<4xf32> to vector<1x4xf32>
    %12 = vector.broadcast %11 : vector<1x4xf32> to vector<2x4xf32>
    %13 = arith.mulf %8, %12 : vector<2x4xf32>
    %14 = arith.addf %7, %13 : vector<2x4xf32>
    %c0_6 = arith.constant 0 : index
    %c8 = arith.constant 8 : index
    %15 = vector.load %arg1[%c0_6, %c8] : memref<2x20xf32, #tpu.memory_space<vmem>>, vector<2x4xf32>
    %16 = vector.extract_strided_slice %0 {offsets = [0, 8], sizes = [1, 4], strides = [1, 1]} : vector<3x20xf32> to vector<1x4xf32>
    %17 = vector.shape_cast %16 : vector<1x4xf32> to vector<4xf32>
    %18 = vector.shape_cast %17 : vector<4xf32> to vector<1x4xf32>
    %19 = vector.broadcast %18 : vector<1x4xf32> to vector<2x4xf32>
    %20 = arith.mulf %15, %19 : vector<2x4xf32>
    %21 = arith.addf %14, %20 : vector<2x4xf32>
    %c0_7 = arith.constant 0 : index
    %c12 = arith.constant 12 : index
    %22 = vector.load %arg1[%c0_7, %c12] : memref<2x20xf32, #tpu.memory_space<vmem>>, vector<2x4xf32>
    %23 = vector.extract_strided_slice %0 {offsets = [0, 12], sizes = [1, 4], strides = [1, 1]} : vector<3x20xf32> to vector<1x4xf32>
    %24 = vector.shape_cast %23 : vector<1x4xf32> to vector<4xf32>
    %25 = vector.shape_cast %24 : vector<4xf32> to vector<1x4xf32>
    %26 = vector.broadcast %25 : vector<1x4xf32> to vector<2x4xf32>
    %27 = arith.mulf %22, %26 : vector<2x4xf32>
    %28 = arith.addf %21, %27 : vector<2x4xf32>
    %c0_8 = arith.constant 0 : index
    %c16 = arith.constant 16 : index
    %29 = vector.load %arg1[%c0_8, %c16] : memref<2x20xf32, #tpu.memory_space<vmem>>, vector<2x4xf32>
    %30 = vector.extract_strided_slice %0 {offsets = [0, 16], sizes = [1, 4], strides = [1, 1]} : vector<3x20xf32> to vector<1x4xf32>
    %31 = vector.shape_cast %30 : vector<1x4xf32> to vector<4xf32>
    %32 = vector.shape_cast %31 : vector<4xf32> to vector<1x4xf32>
    %33 = vector.broadcast %32 : vector<1x4xf32> to vector<2x4xf32>
    %34 = arith.mulf %29, %33 : vector<2x4xf32>
    %35 = arith.addf %28, %34 : vector<2x4xf32>
    %36 = vector.extract_strided_slice %1 {offsets = [0, 0], sizes = [1, 4], strides = [1, 1]} : vector<3x4xf32> to vector<1x4xf32>
    %37 = vector.shape_cast %36 : vector<1x4xf32> to vector<4xf32>
    %38 = vector.shape_cast %37 : vector<4xf32> to vector<1x4xf32>
    %39 = vector.broadcast %38 : vector<1x4xf32> to vector<2x4xf32>
    %40 = arith.addf %35, %39 : vector<2x4xf32>
    %c0_9 = arith.constant 0 : index
    %c0_10 = arith.constant 0 : index
    %41 = vector.load %arg4[%c0_9, %c0_10] : memref<2x12xf32, #tpu.memory_space<vmem>>, vector<2x4xf32>
    tpu.vector_store %arg4[%c0_9, %c0_10], %40 {strides = array<i32>} : memref<2x12xf32, #tpu.memory_space<vmem>>, vector<2x4xf32>,
    %c0_11 = arith.constant 0 : index
    %c0_12 = arith.constant 0 : index
    %42 = vector.load %arg1[%c0_11, %c0_12] : memref<2x20xf32, #tpu.memory_space<vmem>>, vector<2x4xf32>
    %43 = vector.extract_strided_slice %0 {offsets = [1, 0], sizes = [1, 4], strides = [1, 1]} : vector<3x20xf32> to vector<1x4xf32>
    %44 = vector.shape_cast %43 : vector<1x4xf32> to vector<4xf32>
    %45 = vector.shape_cast %44 : vector<4xf32> to vector<1x4xf32>
    %46 = vector.broadcast %45 : vector<1x4xf32> to vector<2x4xf32>
    %47 = arith.mulf %42, %46 : vector<2x4xf32>
    %c0_13 = arith.constant 0 : index
    %c4_14 = arith.constant 4 : index
    %48 = vector.load %arg1[%c0_13, %c4_14] : memref<2x20xf32, #tpu.memory_space<vmem>>, vector<2x4xf32>
    %49 = vector.extract_strided_slice %0 {offsets = [1, 4], sizes = [1, 4], strides = [1, 1]} : vector<3x20xf32> to vector<1x4xf32>
    %50 = vector.shape_cast %49 : vector<1x4xf32> to vector<4xf32>
    %51 = vector.shape_cast %50 : vector<4xf32> to vector<1x4xf32>
    %52 = vector.broadcast %51 : vector<1x4xf32> to vector<2x4xf32>
    %53 = arith.mulf %48, %52 : vector<2x4xf32>
    %54 = arith.addf %47, %53 : vector<2x4xf32>
    %c0_15 = arith.constant 0 : index
    %c8_16 = arith.constant 8 : index
    %55 = vector.load %arg1[%c0_15, %c8_16] : memref<2x20xf32, #tpu.memory_space<vmem>>, vector<2x4xf32>
    %56 = vector.extract_strided_slice %0 {offsets = [1, 8], sizes = [1, 4], strides = [1, 1]} : vector<3x20xf32> to vector<1x4xf32>
    %57 = vector.shape_cast %56 : vector<1x4xf32> to vector<4xf32>
    %58 = vector.shape_cast %57 : vector<4xf32> to vector<1x4xf32>
    %59 = vector.broadcast %58 : vector<1x4xf32> to vector<2x4xf32>
    %60 = arith.mulf %55, %59 : vector<2x4xf32>
    %61 = arith.addf %54, %60 : vector<2x4xf32>
    %c0_17 = arith.constant 0 : index
    %c12_18 = arith.constant 12 : index
    %62 = vector.load %arg1[%c0_17, %c12_18] : memref<2x20xf32, #tpu.memory_space<vmem>>, vector<2x4xf32>
    %63 = vector.extract_strided_slice %0 {offsets = [1, 12], sizes = [1, 4], strides = [1, 1]} : vector<3x20xf32> to vector<1x4xf32>
    %64 = vector.shape_cast %63 : vector<1x4xf32> to vector<4xf32>
    %65 = vector.shape_cast %64 : vector<4xf32> to vector<1x4xf32>
    %66 = vector.broadcast %65 : vector<1x4xf32> to vector<2x4xf32>
    %67 = arith.mulf %62, %66 : vector<2x4xf32>
    %68 = arith.addf %61, %67 : vector<2x4xf32>
    %c0_19 = arith.constant 0 : index
    %c16_20 = arith.constant 16 : index
    %69 = vector.load %arg1[%c0_19, %c16_20] : memref<2x20xf32, #tpu.memory_space<vmem>>, vector<2x4xf32>
    %70 = vector.extract_strided_slice %0 {offsets = [1, 16], sizes = [1, 4], strides = [1, 1]} : vector<3x20xf32> to vector<1x4xf32>
    %71 = vector.shape_cast %70 : vector<1x4xf32> to vector<4xf32>
    %72 = vector.shape_cast %71 : vector<4xf32> to vector<1x4xf32>
    %73 = vector.broadcast %72 : vector<1x4xf32> to vector<2x4xf32>
    %74 = arith.mulf %69, %73 : vector<2x4xf32>
    %75 = arith.addf %68, %74 : vector<2x4xf32>
    %76 = vector.extract_strided_slice %1 {offsets = [1, 0], sizes = [1, 4], strides = [1, 1]} : vector<3x4xf32> to vector<1x4xf32>
    %77 = vector.shape_cast %76 : vector<1x4xf32> to vector<4xf32>
    %78 = vector.shape_cast %77 : vector<4xf32> to vector<1x4xf32>
    %79 = vector.broadcast %78 : vector<1x4xf32> to vector<2x4xf32>
    %80 = arith.addf %75, %79 : vector<2x4xf32>
    %c0_21 = arith.constant 0 : index
    %c4_22 = arith.constant 4 : index
    %81 = vector.load %arg4[%c0_21, %c4_22] : memref<2x12xf32, #tpu.memory_space<vmem>>, vector<2x4xf32>
    tpu.vector_store %arg4[%c0_21, %c4_22], %80 {strides = array<i32>} : memref<2x12xf32, #tpu.memory_space<vmem>>, vector<2x4xf32>,
    %c0_23 = arith.constant 0 : index
    %c0_24 = arith.constant 0 : index
    %82 = vector.load %arg1[%c0_23, %c0_24] : memref<2x20xf32, #tpu.memory_space<vmem>>, vector<2x4xf32>
    %83 = vector.extract_strided_slice %0 {offsets = [2, 0], sizes = [1, 4], strides = [1, 1]} : vector<3x20xf32> to vector<1x4xf32>
    %84 = vector.shape_cast %83 : vector<1x4xf32> to vector<4xf32>
    %85 = vector.shape_cast %84 : vector<4xf32> to vector<1x4xf32>
    %86 = vector.broadcast %85 : vector<1x4xf32> to vector<2x4xf32>
    %87 = arith.mulf %82, %86 : vector<2x4xf32>
    %c0_25 = arith.constant 0 : index
    %c4_26 = arith.constant 4 : index
    %88 = vector.load %arg1[%c0_25, %c4_26] : memref<2x20xf32, #tpu.memory_space<vmem>>, vector<2x4xf32>
    %89 = vector.extract_strided_slice %0 {offsets = [2, 4], sizes = [1, 4], strides = [1, 1]} : vector<3x20xf32> to vector<1x4xf32>
    %90 = vector.shape_cast %89 : vector<1x4xf32> to vector<4xf32>
    %91 = vector.shape_cast %90 : vector<4xf32> to vector<1x4xf32>
    %92 = vector.broadcast %91 : vector<1x4xf32> to vector<2x4xf32>
    %93 = arith.mulf %88, %92 : vector<2x4xf32>
    %94 = arith.addf %87, %93 : vector<2x4xf32>
    %c0_27 = arith.constant 0 : index
    %c8_28 = arith.constant 8 : index
    %95 = vector.load %arg1[%c0_27, %c8_28] : memref<2x20xf32, #tpu.memory_space<vmem>>, vector<2x4xf32>
    %96 = vector.extract_strided_slice %0 {offsets = [2, 8], sizes = [1, 4], strides = [1, 1]} : vector<3x20xf32> to vector<1x4xf32>
    %97 = vector.shape_cast %96 : vector<1x4xf32> to vector<4xf32>
    %98 = vector.shape_cast %97 : vector<4xf32> to vector<1x4xf32>
    %99 = vector.broadcast %98 : vector<1x4xf32> to vector<2x4xf32>
    %100 = arith.mulf %95, %99 : vector<2x4xf32>
    %101 = arith.addf %94, %100 : vector<2x4xf32>
    %c0_29 = arith.constant 0 : index
    %c12_30 = arith.constant 12 : index
    %102 = vector.load %arg1[%c0_29, %c12_30] : memref<2x20xf32, #tpu.memory_space<vmem>>, vector<2x4xf32>
    %103 = vector.extract_strided_slice %0 {offsets = [2, 12], sizes = [1, 4], strides = [1, 1]} : vector<3x20xf32> to vector<1x4xf32>
    %104 = vector.shape_cast %103 : vector<1x4xf32> to vector<4xf32>
    %105 = vector.shape_cast %104 : vector<4xf32> to vector<1x4xf32>
    %106 = vector.broadcast %105 : vector<1x4xf32> to vector<2x4xf32>
    %107 = arith.mulf %102, %106 : vector<2x4xf32>
    %108 = arith.addf %101, %107 : vector<2x4xf32>
    %c0_31 = arith.constant 0 : index
    %c16_32 = arith.constant 16 : index
    %109 = vector.load %arg1[%c0_31, %c16_32] : memref<2x20xf32, #tpu.memory_space<vmem>>, vector<2x4xf32>
    %110 = vector.extract_strided_slice %0 {offsets = [2, 16], sizes = [1, 4], strides = [1, 1]} : vector<3x20xf32> to vector<1x4xf32>
    %111 = vector.shape_cast %110 : vector<1x4xf32> to vector<4xf32>
    %112 = vector.shape_cast %111 : vector<4xf32> to vector<1x4xf32>
    %113 = vector.broadcast %112 : vector<1x4xf32> to vector<2x4xf32>
    %114 = arith.mulf %109, %113 : vector<2x4xf32>
    %115 = arith.addf %108, %114 : vector<2x4xf32>
    %116 = vector.extract_strided_slice %1 {offsets = [2, 0], sizes = [1, 4], strides = [1, 1]} : vector<3x4xf32> to vector<1x4xf32>
    %117 = vector.shape_cast %116 : vector<1x4xf32> to vector<4xf32>
    %118 = vector.shape_cast %117 : vector<4xf32> to vector<1x4xf32>
    %119 = vector.broadcast %118 : vector<1x4xf32> to vector<2x4xf32>
    %120 = arith.addf %115, %119 : vector<2x4xf32>
    %c0_33 = arith.constant 0 : index
    %c8_34 = arith.constant 8 : index
    %121 = vector.load %arg4[%c0_33, %c8_34] : memref<2x12xf32, #tpu.memory_space<vmem>>, vector<2x4xf32>
    tpu.vector_store %arg4[%c0_33, %c8_34], %120 {strides = array<i32>} : memref<2x12xf32, #tpu.memory_space<vmem>>, vector<2x4xf32>,
    return
  }
  func.func @transform_0(%arg0: i32) -> (i32, i32) {
    %c0_i32 = arith.constant 0 : i32
    %c0_i32_0 = arith.constant 0 : i32
    return %arg0, %c0_i32 : i32, i32
  }
  func.func @transform_1(%arg0: i32) -> (i32, i32) {
    %c0_i32 = arith.constant 0 : i32
    %c0_i32_0 = arith.constant 0 : i32
    %c0_i32_1 = arith.constant 0 : i32
    return %c0_i32, %c0_i32_0 : i32, i32
  }
  func.func @transform_2(%arg0: i32) -> (i32, i32) {
    %c0_i32 = arith.constant 0 : i32
    %c0_i32_0 = arith.constant 0 : i32
    %c0_i32_1 = arith.constant 0 : i32
    return %c0_i32, %c0_i32_0 : i32, i32
  }
  func.func @transform_3(%arg0: i32) -> (i32, i32) {
    %c0_i32 = arith.constant 0 : i32
    %c0_i32_0 = arith.constant 0 : i32
    return %arg0, %c0_i32 : i32, i32
  }
}

</mosaic_0001>

<bundles_post_ra>
// kernel: tpu_custom_call.1
= control target key start
LH: loop header
LB: loop body
LE: loop exit
PB: predicated region body
PF: predicated region fallthrough
CT: control target
= control target key end

     0   :  { %8 = vsyncpa [#allocation3], 0  ;;  %s310_s0 = inlined_call_operand.hbm [shape: f32[2,20], index: 0, kind: input, shape index: {}]   ;;  %s311_s1 = inlined_call_operand.hbm [shape: f32[3,20], index: 1, kind: input, shape index: {}]   ;;  %s312_s2 = inlined_call_operand.hbm [shape: f32[3,4], index: 2, kind: input, shape index: {}]   ;;  %s313_s3 = inlined_call_operand.hbm [shape: f32[2,12], index: 3, kind: output, shape index: {}]  }
   0x1   :  { %9 = vsyncpa [#allocation6], 0  ;;  %s27_s14 = sshll.u32 %s311_s1, 4  ;;  %s28_s14 = int_to_ptr.hbm [resolvable:$true] %s27_s14 }
   0x2   :  { %10 = vsyncpa [#allocation4], 0  ;;  %s268_s15 = smov [#allocation5]   ;;  %s16_s19 = sshll.u32 %s310_s0, 4  ;;  %s17_s19 = int_to_ptr.hbm [resolvable:$true] %s16_s19 }
   0x3   :  { %s29_s16 = sshll.u32 %s268_s15, 4  ;;  %s269_s20 = smov [#allocation2]   ;;  %s30_s16 = int_to_ptr.vmem [resolvable:$true] %s29_s16 }
   0x4   :  { %32 = dma.hbm_to_vmem [thread:$0]  %s28_s14, 64, %s30_s16, [#allocation6]  }
   0x5   :  { %s18_s21 = sshll.u32 %s269_s20, 4  ;;  %s38_s24 = sshll.u32 %s312_s2, 4  ;;  %s19_s21 = int_to_ptr.vmem [resolvable:$true] %s18_s21  ;;  %s39_s24 = int_to_ptr.hbm [resolvable:$true] %s38_s24 }
   0x6   :  { %21 = dma.hbm_to_vmem [thread:$0]  %s17_s19, 32, %s19_s21, [#allocation3]  }
   0x7   :  { %s270_s1 = smov [#allocation7]  }
   0x8   :  { %s40_s25 = sshll.u32 %s270_s1, 4  ;;  %s41_s25 = int_to_ptr.vmem [resolvable:$true] %s40_s25 }
   0x9   :  { %43 = dma.hbm_to_vmem [thread:$0]  %s39_s24, 64, %s41_s25, [#allocation6]  }
   0xa   :  { %262 = dma.done.wait [#allocation3], 32  }
   0xb   :  { %263 = vsyncadd [#allocation3], 4294967264 }
   0xc   :  { %264 = dma.done.wait [#allocation6], 128  }
   0xd   :  { %265 = vsyncadd [#allocation6], 4294967168  ;;  %v56_v0 = vld [vmem:[#allocation5] sm:$0x7]  ;;  %v82_v1 = vld [vmem:[#allocation2] sm:$0x3] }
   0xe   :  { %v83_v2 = vperm.slane %v56_v0, 1  ;;  %s271_s0 = smov 120   ;;  %s272_s26 = smov 124   ;;  %v111_v4 = vperm.slane %v56_v0, 2  ;;  %v110_v5 = vld [vmem:[#allocation2] sm:$0x3] }
   0xf   :  { %s273_s2 = smov 116   ;;  %s274_s27 = smov 112   ;;  %v59_v7 = vperm.slane %v56_v0, 0  ;;  %v58_v8 = vld [vmem:[#allocation2] sm:$0x3]  ;;  %vm80_vm0 = vcmask 25600  }
  0x10   :  { %v84_v3 = vmul.f32 %v83_v2, %v82_v1  ;;  %v112_v6 = vmul.f32 %v111_v4, %v110_v5  ;;  %v57_v20 = vld [vmem:[#allocation7] sm:$0x7]  ;;  %s275_s28 = smov 8   ;;  %s276_s29 = smov 4   ;;  %vm108_vm1 = vcmask 58400   ;;  %vm136_vm2 = vcmask 91200  }
  0x11   :  { %v60_v9 = vmul.f32 %v59_v7, %v58_v8  ;;  %v130_v23 = vperm.slane %v57_v20, 2  ;;  %v102_v24 = vperm.slane %v57_v20, 1  ;;  %v78_v38 = vperm.slane %v57_v20, 0  ;;  %s277_s30 = smov [#allocation8]   ;;  %s145_s7 = sshll.u32 %s313_s3, 4  ;;  %s146_s7 = int_to_ptr.hbm [resolvable:$true] %s145_s7 }
  0x12   :  { %90 = vrot.lane.b32.xlu1 %v84_v3, %s271_s0  ;;  %86 = vrot.lane.b32.xlu0 %v84_v3, %s272_s26  ;;  %s143_s4 = sshll.u32 %s277_s30, 4  ;;  %s144_s4 = int_to_ptr.vmem [resolvable:$true] %s143_s4 }
  0x13   :  { %94 = vrot.lane.b32.xlu2 %v84_v3, %s273_s2 }
  0x1a   :  { %118 = vrot.lane.b32.xlu1 %v112_v6, %s271_s0  ;;  %114 = vrot.lane.b32.xlu0 %v112_v6, %s272_s26 }
  0x1b   :  { %122 = vrot.lane.b32.xlu2 %v112_v6, %s273_s2 }
  0x22   :  { %126 = vrot.lane.b32.xlu1 %v112_v6, %s274_s27  ;;  %98 = vrot.lane.b32.xlu0 %v84_v3, %s274_s27 }
  0x23   :  { %62 = vrot.lane.b32.xlu2 %v60_v9, %s272_s26 }
  0x2a   :  { %66 = vrot.lane.b32.xlu0 %v60_v9, %s271_s0  ;;  %70 = vrot.lane.b32.xlu1 %v60_v9, %s273_s2 }
  0x2b   :  { %74 = vrot.lane.b32.xlu2 %v60_v9, %s274_s27 }
  0x6d   :  { %v95_v12 = vpop.permute.xlu2 %94 }
  0x75   :  { %v123_v19 = vpop.permute.xlu2 %122 }
  0x7d   :  { %v63_v31 = vpop.permute.xlu2 %62 }
  0x7e   :  { %v65_v32 = vadd.f32 %v63_v31, %v60_v9 }
  0x84   :  { %v91_v10 = vpop.permute.xlu1 %90  ;;  %v87_v11 = vpop.permute.xlu0 %86 }
  0x85   :  { %v89_v13 = vadd.f32 %v87_v11, %v84_v3  ;;  %v75_v36 = vpop.permute.xlu2 %74 }
  0x87   :  { %v93_v17 = vadd.f32 %v91_v10, %v89_v13 }
  0x89   :  { %v97_v21 = vadd.f32 %v95_v12, %v93_v17 }
  0x8c   :  { %v119_v14 = vpop.permute.xlu1 %118  ;;  %v115_v15 = vpop.permute.xlu0 %114 }
  0x8d   :  { %v117_v16 = vadd.f32 %v115_v15, %v112_v6 }
  0x8f   :  { %v121_v18 = vadd.f32 %v119_v14, %v117_v16 }
  0x91   :  { %v125_v22 = vadd.f32 %v123_v19, %v121_v18 }
  0x94   :  { %v127_v25 = vpop.permute.xlu1 %126  ;;  %v99_v26 = vpop.permute.xlu0 %98 }
  0x95   :  { %v129_v27 = vadd.f32 %v127_v25, %v125_v22  ;;  %v101_v28 = vadd.f32 %v99_v26, %v97_v21 }
  0x97   :  { %v131_v29 = vadd.f32 %v130_v23, %v129_v27  ;;  %v103_v30 = vadd.f32 %v102_v24, %v101_v28 }
  0x99   :  { %133 = vrot.lane.b32.xlu1 %v131_v29, %s275_s28  ;;  %105 = vrot.lane.b32.xlu0 %v103_v30, %s276_s29 }
  0x9c   :  { %v67_v33 = vpop.permute.xlu0 %66  ;;  %v71_v34 = vpop.permute.xlu1 %70 }
  0x9d   :  { %v69_v35 = vadd.f32 %v67_v33, %v65_v32 }
  0x9f   :  { %v73_v37 = vadd.f32 %v71_v34, %v69_v35 }
  0xa1   :  { %v77_v39 = vadd.f32 %v75_v36, %v73_v37 }
  0xa3   :  { %v79_v40 = vadd.f32 %v78_v38, %v77_v39 }
  0xa5   :  { %81 = vst.msk [vmem:[#allocation8] sm:$0x3] %vm80_vm0, %v79_v40 }
 0x10b   :  { %v134_v41 = vpop.permute.xlu1 %133  ;;  %v106_v42 = vpop.permute.xlu0 %105 }
 0x10c   :  { %109 = vst.msk [vmem:[#allocation8] sm:$0x3] %vm108_vm1, %v106_v42 }
 0x10d   :  { %137 = vst.msk [vmem:[#allocation8] sm:$0x3] %vm136_vm2, %v134_v41 }
 0x10e   :  { %148 = dma.vmem_to_hbm [thread:$0]  %s144_s4, 32, %s146_s7, [#allocation4]  }
 0x10f   :  { %266 = dma.done.wait [#allocation4], 32  }
 0x110   :  { %267 = vsyncadd [#allocation4], 4294967264 }
 0x111   :  { %153 = vsyncpa [#allocation3], 1 }
 0x112   :  { %154 = vsyncpa [#allocation6], 1 }
 0x113   :  { %155 = vsyncpa [#allocation4], 1 }

</bundles_post_ra>
